<compile_context>
chip_gen: v6e
topology: v6e:2x2x1
jax: 0.10.0
libtpu: 0.0.40
codegen_flags: <defaults>
</compile_context>

<pallas_src>
import jax
import jax.numpy as jnp
from jax.experimental import pallas as pl
from jax.experimental.pallas import tpu as pltpu

_LANE = 128
_NEG_INF = -1e30


def _gcn_layer1_kernel(adj_ref, x_ref, w1_ref, b1_ref, w2_ref, s2_ref):
    # adj_ref: [tm, N] bf16 row tile; x_ref: [N, Din] bf16 (resident in VMEM).
    # Reassociated: (adj @ x) @ W1 — adj contracts against the narrow Din.
    t = jnp.dot(adj_ref[...], x_ref[...], preferred_element_type=jnp.float32)       # [tm, Din] f32
    h = jnp.dot(t, w1_ref[...], preferred_element_type=jnp.float32) + b1_ref[...]   # [tm, Hp]  f32
    h = jnp.maximum(h, 0.0)
    # TODO(synk): F.dropout with training=True is stochastic; implemented as the
    # inference-mode identity (training=False path).
    s2 = jnp.dot(h, w2_ref[...], preferred_element_type=jnp.float32)                # [tm, Op]  f32
    s2_ref[...] = s2.astype(s2_ref.dtype)                                           # bf16 store


def _gcn_layer2_kernel(adj_ref, s2_ref, b2_ref, out_ref):
    # z = adj @ support2 + b2; padded output columns carry bias -1e30 so their
    # exp() contribution to the log_softmax normalizer is zero.
    z = jnp.dot(adj_ref[...], s2_ref[...], preferred_element_type=jnp.float32) + b2_ref[...]
    m = jnp.max(z, axis=1, keepdims=True)
    s = z - m
    lse = jnp.log(jnp.sum(jnp.exp(s), axis=1, keepdims=True))
    out_ref[...] = s - lse


def _pick_row_tile(n):
    for cand in (256, 128, 64, 32, 16, 8):
        if n % cand == 0:
            return cand
    return n


def _pad_to(v, m):
    return ((v + m - 1) // m) * m


def gcn_forward(x, adj, w1, b1, w2, b2):
    n, din = x.shape
    h_dim = w1.shape[1]
    d_out = w2.shape[1]
    hp = _pad_to(h_dim, _LANE)
    op = _pad_to(d_out, _LANE)
    tm = _pick_row_tile(n)
    grid = (n // tm,)

    # bf16 for the bandwidth-dominant adj matmul operands; f32 accumulation.
    adj_bf = adj.astype(jnp.bfloat16)
    x_bf = x.astype(jnp.bfloat16)

    # Lane-dense (128-multiple) padded weights / biases.
    w1_p = jnp.pad(w1, ((0, 0), (0, hp - h_dim)))
    b1_p = jnp.pad(b1.reshape(1, -1), ((0, 0), (0, hp - h_dim)))
    w2_p = jnp.pad(w2, ((0, hp - h_dim), (0, op - d_out)))
    b2_p = jnp.pad(b2.reshape(1, -1), ((0, 0), (0, op - d_out)),
                   constant_values=_NEG_INF)

    params = pltpu.CompilerParams(dimension_semantics=("parallel",))

    # --- Layer 1 (+ the small h @ W2): row-tiled over nodes ---
    s2 = pl.pallas_call(
        _gcn_layer1_kernel,
        out_shape=jax.ShapeDtypeStruct((n, op), jnp.bfloat16),
        grid=grid,
        in_specs=[
            pl.BlockSpec((tm, n), lambda i: (i, 0)),     # adj row tile (bf16)
            pl.BlockSpec((n, din), lambda i: (0, 0)),    # x, resident
            pl.BlockSpec((din, hp), lambda i: (0, 0)),   # W1, resident
            pl.BlockSpec((1, hp), lambda i: (0, 0)),     # b1, resident
            pl.BlockSpec((hp, op), lambda i: (0, 0)),    # W2, resident
        ],
        out_specs=pl.BlockSpec((tm, op), lambda i: (i, 0)),
        compiler_params=params,
    )(adj_bf, x_bf, w1_p, b1_p, w2_p)

    # --- Layer 2: z = adj @ support2 + b2, then log_softmax (lane-dense out) ---
    out_p = pl.pallas_call(
        _gcn_layer2_kernel,
        out_shape=jax.ShapeDtypeStruct((n, op), jnp.float32),
        grid=grid,
        in_specs=[
            pl.BlockSpec((tm, n), lambda i: (i, 0)),     # adj row tile (bf16)
            pl.BlockSpec((n, op), lambda i: (0, 0)),     # support2, resident
            pl.BlockSpec((1, op), lambda i: (0, 0)),     # b2 (padded cols = -1e30)
        ],
        out_specs=pl.BlockSpec((tm, op), lambda i: (i, 0)),
        compiler_params=params,
    )(adj_bf, s2, b2_p)

    # Slice away the lane padding outside the kernel (cheap XLA slice).
    return out_p[:, :d_out]


def xavier_uniform(key, fan_in, fan_out):
    bound = jnp.sqrt(6.0 / (fan_in + fan_out))
    return jax.random.uniform(key, (fan_in, fan_out), jnp.float32, -bound, bound)


if __name__ == "__main__":
    # Small, deterministic problem: N nodes, input_dim -> hidden_dim -> output_dim
    N, input_dim, hidden_dim, output_dim = 128, 32, 64, 16

    key = jax.random.PRNGKey(0)
    k_x, k_adj, k_w1, k_w2 = jax.random.split(key, 4)

    # Node features
    x = jax.random.normal(k_x, (N, input_dim), jnp.float32)

    # Symmetric, row-normalized adjacency with self-loops (typical GCN input)
    a = (jax.random.uniform(k_adj, (N, N)) < 0.05).astype(jnp.float32)
    a = jnp.maximum(a, a.T) + jnp.eye(N, dtype=jnp.float32)
    adj = a / jnp.sum(a, axis=1, keepdims=True)

    # Parameters (xavier_uniform weights, constant 0.1 biases — matches __init__)
    w1 = xavier_uniform(k_w1, input_dim, hidden_dim)
    b1 = jnp.full((hidden_dim,), 0.1, jnp.float32)
    w2 = xavier_uniform(k_w2, hidden_dim, output_dim)
    b2 = jnp.full((output_dim,), 0.1, jnp.float32)

    out = gcn_forward(x, adj, w1, b1, w2, b2)
    jax.block_until_ready(out)

    # Sanity: log_softmax rows should (approximately) exp-sum to 1
    row_sums = jnp.sum(jnp.exp(out), axis=1)
    assert out.shape == (N, output_dim)
    assert bool(jnp.all(jnp.abs(row_sums - 1.0) < 1e-4))

    print("KERNEL_OK")
</pallas_src>

<mosaic_0001>
module attributes {stable_mosaic.version = 11 : i64} {
  func.func @_gcn_layer1_kernel(%arg0: i32, %arg1: memref<128x128xbf16, #tpu.memory_space<vmem>>, %arg2: memref<128x32xbf16, #tpu.memory_space<vmem>>, %arg3: memref<32x128xf32, #tpu.memory_space<vmem>>, %arg4: memref<1x128xf32, #tpu.memory_space<vmem>>, %arg5: memref<128x128xf32, #tpu.memory_space<vmem>>, %arg6: memref<128x128xbf16, #tpu.memory_space<vmem>>) attributes {dimension_semantics = [#tpu.dimension_semantics<parallel>], iteration_bounds = array<i64: 1>, scalar_prefetch = 0 : i64, scratch_operands = 0 : i64, tpu.core_type = #tpu.core_type<tc>, window_params = [{transform_indices = @transform_0, window_bounds = array<i64: 128, 128>}, {pipeline_mode = #tpu.pipeline_mode<synchronous>, transform_indices = @transform_1, window_bounds = array<i64: 128, 32>}, {pipeline_mode = #tpu.pipeline_mode<synchronous>, transform_indices = @transform_2, window_bounds = array<i64: 32, 128>}, {pipeline_mode = #tpu.pipeline_mode<synchronous>, transform_indices = @transform_3, window_bounds = array<i64: 1, 128>}, {pipeline_mode = #tpu.pipeline_mode<synchronous>, transform_indices = @transform_4, window_bounds = array<i64: 128, 128>}, {transform_indices = @transform_5, window_bounds = array<i64: 128, 128>}]} {
    %c0 = arith.constant 0 : index
    %c0_0 = arith.constant 0 : index
    %0 = vector.load %arg1[%c0, %c0_0] : memref<128x128xbf16, #tpu.memory_space<vmem>>, vector<128x128xbf16>
    %c0_1 = arith.constant 0 : index
    %c0_2 = arith.constant 0 : index
    %1 = vector.load %arg2[%c0_1, %c0_2] : memref<128x32xbf16, #tpu.memory_space<vmem>>, vector<128x32xbf16>
    %cst = arith.constant dense<0.000000e+00> : vector<128x32xf32>
    %2 = tpu.matmul %0, %1, %cst {dimension_numbers = #tpu.dot_dimension_numbers<[1], [0], [0], [1], [0, 0, 1, 1], [], []>} : vector<128x128xbf16>, vector<128x32xbf16>, vector<128x32xf32> -> vector<128x32xf32>
    %c0_3 = arith.constant 0 : index
    %c0_4 = arith.constant 0 : index
    %3 = vector.load %arg3[%c0_3, %c0_4] : memref<32x128xf32, #tpu.memory_space<vmem>>, vector<32x128xf32>
    %cst_5 = arith.constant dense<0.000000e+00> : vector<128x128xf32>
    %4 = tpu.matmul %2, %3, %cst_5 {dimension_numbers = #tpu.dot_dimension_numbers<[1], [0], [0], [1], [0, 0, 1, 1], [], []>} : vector<128x32xf32>, vector<32x128xf32>, vector<128x128xf32> -> vector<128x128xf32>
    %c0_6 = arith.constant 0 : index
    %c0_7 = arith.constant 0 : index
    %5 = vector.load %arg4[%c0_6, %c0_7] : memref<1x128xf32, #tpu.memory_space<vmem>>, vector<1x128xf32>
    %6 = vector.broadcast %5 : vector<1x128xf32> to vector<128x128xf32>
    %7 = arith.addf %4, %6 : vector<128x128xf32>
    %cst_8 = arith.constant 0.000000e+00 : f32
    %8 = vector.broadcast %cst_8 : f32 to vector<128x128xf32>
    %9 = arith.maximumf %7, %8 : vector<128x128xf32>
    %c0_9 = arith.constant 0 : index
    %c0_10 = arith.constant 0 : index
    %10 = vector.load %arg5[%c0_9, %c0_10] : memref<128x128xf32, #tpu.memory_space<vmem>>, vector<128x128xf32>
    %cst_11 = arith.constant dense<0.000000e+00> : vector<128x128xf32>
    %11 = tpu.matmul %9, %10, %cst_11 {dimension_numbers = #tpu.dot_dimension_numbers<[1], [0], [0], [1], [0, 0, 1, 1], [], []>} : vector<128x128xf32>, vector<128x128xf32>, vector<128x128xf32> -> vector<128x128xf32>
    %12 = arith.truncf %11 : vector<128x128xf32> to vector<128x128xbf16>
    %c0_12 = arith.constant 0 : index
    %c0_13 = arith.constant 0 : index
    %13 = vector.load %arg6[%c0_12, %c0_13] : memref<128x128xbf16, #tpu.memory_space<vmem>>, vector<128x128xbf16>
    tpu.vector_store %arg6[%c0_12, %c0_13], %12 {strides = array<i32>} : memref<128x128xbf16, #tpu.memory_space<vmem>>, vector<128x128xbf16>,
    return
  }
  func.func @transform_0(%arg0: i32) -> (i32, i32) {
    %c0_i32 = arith.constant 0 : i32
    %c0_i32_0 = arith.constant 0 : i32
    return %arg0, %c0_i32 : i32, i32
  }
  func.func @transform_1(%arg0: i32) -> (i32, i32) {
    %c0_i32 = arith.constant 0 : i32
    %c0_i32_0 = arith.constant 0 : i32
    %c0_i32_1 = arith.constant 0 : i32
    return %c0_i32, %c0_i32_0 : i32, i32
  }
  func.func @transform_2(%arg0: i32) -> (i32, i32) {
    %c0_i32 = arith.constant 0 : i32
    %c0_i32_0 = arith.constant 0 : i32
    %c0_i32_1 = arith.constant 0 : i32
    return %c0_i32, %c0_i32_0 : i32, i32
  }
  func.func @transform_3(%arg0: i32) -> (i32, i32) {
    %c0_i32 = arith.constant 0 : i32
    %c0_i32_0 = arith.constant 0 : i32
    %c0_i32_1 = arith.constant 0 : i32
    return %c0_i32, %c0_i32_0 : i32, i32
  }
  func.func @transform_4(%arg0: i32) -> (i32, i32) {
    %c0_i32 = arith.constant 0 : i32
    %c0_i32_0 = arith.constant 0 : i32
    %c0_i32_1 = arith.constant 0 : i32
    return %c0_i32, %c0_i32_0 : i32, i32
  }
  func.func @transform_5(%arg0: i32) -> (i32, i32) {
    %c0_i32 = arith.constant 0 : i32
    %c0_i32_0 = arith.constant 0 : i32
    return %arg0, %c0_i32 : i32, i32
  }
}

</mosaic_0001>

<bundles_post_ra>
// kernel: tpu_custom_call.1
= control target key start
LH: loop header
LB: loop body
LE: loop exit
PB: predicated region body
PF: predicated region fallthrough
CT: control target
= control target key end

     0   :  { %10 = vsyncpa [#allocation3], 0  ;;  %s1289_s0 = inlined_call_operand.vmem [shape: bf16[128,128], index: 0, kind: input, shape index: {}]   ;;  %s1290_s1 = inlined_call_operand.vmem [shape: bf16[128,32], index: 1, kind: input, shape index: {}]   ;;  %s1291_s2 = inlined_call_operand.hbm [shape: f32[32,128], index: 2, kind: input, shape index: {}]   ;;  %s1292_s3 = inlined_call_operand.vmem [shape: f32[1,128], index: 3, kind: input, shape index: {}]   ;;  %s1293_s4 = inlined_call_operand.hbm [shape: f32[128,128], index: 4, kind: input, shape index: {}]   ;;  %s1294_s5 = inlined_call_operand.hbm [shape: bf16[128,128], index: 5, kind: output, shape index: {}]  }
   0x1   :  { %11 = vsyncpa [#allocation6], 0 }
   0x2   :  { %12 = vsyncpa [#allocation4], 0  ;;  %s1176_s18 = smov [#allocation2]  }
   0x3   :  { %s22_s19 = sshll.u32 %s1176_s18, 4  ;;  %s23_s19 = int_to_ptr.vmem [resolvable:$true] %s22_s19 }
   0x4   :  { %s1118_s20 = scalar_lea.vmem %s23_s19, 512  ;;  %p1123_p1 = scmp.lt.s32.totalorder %s23_s19, %s23_s19 }
   0x5   :  { %p1119_p0 = scmp.ne.s32.totalorder %s23_s19, %s1118_s20  ;;  %p1124_p2 = scmp.lt.s32.totalorder %s1118_s20, %s1118_s20 }
   0x7   :  { %p1125_p3 = por %p1124_p2, %p1123_p1 }
   0x9   :  { %p1126_p4 = pnand %p1125_p3, %p1119_p0 }
   0xb   :  { %1129 = shalt.err (!%p1126_p4)
}
   0xc   :  { %s1177_s21 = smov 128   ;;  %s1178_s22 = smov 8  }
   0xd   :  { %28 = dma.hbm_to_vmem [thread:$0]  %s1291_s2, 512, %s23_s19, [#allocation3], %s1177_s21, %s1177_s21, %s1178_s22  }
   0xe   :  { %s1179_s25 = smov [#allocation5]  }
   0xf   :  { %s36_s26 = sshll.u32 %s1179_s25, 4  ;;  %s37_s26 = int_to_ptr.vmem [resolvable:$true] %s36_s26 }
  0x10   :  { %s1138_s27 = scalar_lea.vmem %s37_s26, 2048  ;;  %p1143_p6 = scmp.lt.s32.totalorder %s37_s26, %s37_s26 }
  0x11   :  { %p1139_p5 = scmp.ne.s32.totalorder %s37_s26, %s1138_s27  ;;  %p1144_p7 = scmp.lt.s32.totalorder %s1138_s27, %s1138_s27 }
  0x13   :  { %p1145_p8 = por %p1144_p7, %p1143_p6 }
  0x15   :  { %p1146_p9 = pnand %p1145_p8, %p1139_p5 }
  0x17   :  { %1149 = shalt.err (!%p1146_p9)
}
  0x18   :  { %42 = dma.hbm_to_vmem [thread:$0]  %s1293_s4, 2048, %s37_s26, [#allocation6], %s1177_s21, %s1177_s21, %s1178_s22  }
  0x19   :  { %1170 = dma.done.wait [#allocation3], 512  }
  0x1a   :  { %1171 = vsyncadd [#allocation3], 4294966784 }
  0x1b   :  { %1172 = dma.done.wait [#allocation6], 2048  }
  0x1c   :  { %1173 = vsyncadd [#allocation6], 4294965248  ;;  %v1094_v0 = vld [vmem:[%s1290_s1 + $0x38] sm:$0xff]   ;;  %v1095_v1 = vld [vmem:[%s1290_s1 + $0x30] sm:$0xff]   ;;  %vm286_vm0 = vcmask 261120  }
  0x1d   :  { %935 = vmatprep.subr.bf16.mxu0 %v1094_v0  ;;  %v1096_v2 = vld [vmem:[%s1290_s1 + $0x28] sm:$0xff]   ;;  %v1097_v3 = vld [vmem:[%s1290_s1 + $0x20] sm:$0xff]   ;;  %v1098_v5 = vld [vmem:[%s1290_s1 + $0x18] sm:$0xff]  }
  0x1e   :  { %936 = vmatpush3.bf16.msra.mxu0 %v1094_v0  ;;  %v1102_v4 = vld [vmem:[%s1289_s0] sm:$0xff]   ;;  %v1099_v6 = vld [vmem:[%s1290_s1 + $0x10] sm:$0xff]   ;;  %v278_v7 = vld [vmem:[#allocation2 + $0x18] sm:$0xff] }
  0x1f   :  { %937 = vmatprep.subr.bf16.mxu0 %v1095_v1  ;;  %951 = vmatprep.mubr.bf16.mxu0 %v1102_v4  ;;  %v1100_v8 = vld [vmem:[%s1290_s1 + $0x8] sm:$0xff]   ;;  %v1101_v9 = vld [vmem:[%s1290_s1] sm:$0xff]   ;;  %v1104_v11 = vld [vmem:[%s1289_s0 + $0x10] sm:$0xff]  }
  0x20   :  { %967 = vmatprep.subr.mxu1 %v278_v7  ;;  %v1103_v10 = vld [vmem:[%s1289_s0 + $0x8] sm:$0xff]   ;;  %v1105_v12 = vld [vmem:[%s1289_s0 + $0x18] sm:$0xff]   ;;  %v1106_v13 = vld [vmem:[%s1289_s0 + $0x20] sm:$0xff]  }
  0x21   :  { %968 = vmatpush3.msra.mxu1 %v278_v7  ;;  %v1107_v14 = vld [vmem:[%s1289_s0 + $0x28] sm:$0xff]   ;;  %v1108_v15 = vld [vmem:[%s1289_s0 + $0x30] sm:$0xff]   ;;  %v1109_v16 = vld [vmem:[%s1289_s0 + $0x38] sm:$0xff]  }
  0x22   :  { %938 = vmatpush3.bf16.msra.mxu0 %v1095_v1  ;;  %v277_v17 = vld [vmem:[#allocation2 + $0x10] sm:$0xff]  ;;  %v276_v18 = vld [vmem:[#allocation2 + $0x8] sm:$0xff]  ;;  %v275_v19 = vld [vmem:[#allocation2] sm:$0xff] }
  0x23   :  { %939 = vmatprep.subr.bf16.mxu0 %v1096_v2  ;;  %969 = vmatprep.subr.mxu1 %v277_v17  ;;  %v511_v20 = vld [vmem:[#allocation5 + $0x78] sm:$0xff]  ;;  %v510_v21 = vld [vmem:[#allocation5 + $0x70] sm:$0xff]  ;;  %v509_v22 = vld [vmem:[#allocation5 + $0x68] sm:$0xff] }
  0x24   :  { %970 = vmatpush3.msra.mxu1 %v277_v17  ;;  %v508_v23 = vld [vmem:[#allocation5 + $0x60] sm:$0xff]  ;;  %v507_v24 = vld [vmem:[#allocation5 + $0x58] sm:$0xff]  ;;  %v506_v25 = vld [vmem:[#allocation5 + $0x50] sm:$0xff] }
  0x25   :  { %971 = vmatprep.subr.mxu1 %v276_v18  ;;  %v505_v26 = vld [vmem:[#allocation5 + $0x48] sm:$0xff]  ;;  %v504_v27 = vld [vmem:[#allocation5 + $0x40] sm:$0xff]  ;;  %v503_v28 = vld [vmem:[#allocation5 + $0x38] sm:$0xff] }
  0x26   :  { %940 = vmatpush3.bf16.msra.mxu0 %v1096_v2  ;;  %972 = vmatpush3.msra.mxu1 %v276_v18  ;;  %v502_v29 = vld [vmem:[#allocation5 + $0x30] sm:$0xff]  ;;  %v501_v30 = vld [vmem:[#allocation5 + $0x28] sm:$0xff]  ;;  %v500_v31 = vld [vmem:[#allocation5 + $0x20] sm:$0xff] }
  0x27   :  { %941 = vmatprep.subr.bf16.mxu0 %v1097_v3  ;;  %973 = vmatprep.subr.mxu1 %v275_v19  ;;  %v499_v48 = vld [vmem:[#allocation5 + $0x18] sm:$0xff]  ;;  %v498_v49 = vld [vmem:[#allocation5 + $0x10] sm:$0xff]  ;;  %v497_v50 = vld [vmem:[#allocation5 + $0x8] sm:$0xff] }
  0x28   :  { %974 = vmatpush3.msra.mxu1 %v275_v19  ;;  %v496_v51 = vld [vmem:[#allocation5] sm:$0xff] }
  0x29   :  { %1055 = vmatprep.subr.mxu1 %v511_v20  ;;  %v771_v52 = vld [vmem:[%s1292_s3] ss:$0 sm:$0xff]  ;;  %s1180_s3 = smov [#allocation7]  }
  0x2a   :  { %942 = vmatpush3.bf16.msra.mxu0 %v1097_v3  ;;  %s742_s9 = sshll.u32 %s1180_s3, 4  ;;  %s743_s9 = int_to_ptr.vmem [resolvable:$true] %s742_s9 }
  0x2b   :  { %943 = vmatprep.subr.bf16.mxu0 %v1098_v5  ;;  %s1150_s4 = scalar_lea.vmem %s743_s9, 1024  ;;  %p1155_p11 = scmp.lt.s32.totalorder %s743_s9, %s743_s9 }
  0x2c   :  { %p1151_p10 = scmp.ne.s32.totalorder %s743_s9, %s1150_s4  ;;  %p1156_p12 = scmp.lt.s32.totalorder %s1150_s4, %s1150_s4 }
  0x2e   :  { %944 = vmatpush3.bf16.msra.mxu0 %v1098_v5  ;;  %p1157_p13 = por %p1156_p12, %p1155_p11 }
  0x2f   :  { %945 = vmatprep.subr.bf16.mxu0 %v1099_v6 }
  0x30   :  { %p1158_p0 = pnand %p1157_p13, %p1151_p10 }
  0x32   :  { %946 = vmatpush3.bf16.msra.mxu0 %v1099_v6 }
  0x33   :  { %947 = vmatprep.subr.bf16.mxu0 %v1100_v8 }
  0x36   :  { %948 = vmatpush3.bf16.msra.mxu0 %v1100_v8 }
  0x37   :  { %949 = vmatprep.subr.bf16.mxu0 %v1101_v9 }
  0x3a   :  { %950 = vmatpush3.bf16.msra.mxu0 %v1101_v9 }
  0x3b   :  { %999 = vmatprep.subr.mxu0 %v511_v20 }
  0x3d   :  { %952 = vmatmul.mubr.bf16.vlgmr.msra.gmra.mxu0 %v1103_v10 }
  0x3e   :  { %955 = vmatprep.mubr.bf16.mxu0 %v1104_v11  ;;  %1000 = vmatpush3.msra.mxu0 %v511_v20 }
  0x3f   :  { %1001 = vmatprep.subr.mxu0 %v510_v21 }
  0x40   :  { %1002 = vmatpush3.msra.mxu0 %v510_v21 }
  0x41   :  { %1003 = vmatprep.subr.mxu0 %v509_v22 }
  0x42   :  { %1004 = vmatpush3.msra.mxu0 %v509_v22 }
  0x43   :  { %1005 = vmatprep.subr.mxu0 %v508_v23 }
  0x44   :  { %1006 = vmatpush3.msra.mxu0 %v508_v23 }
  0x45   :  { %956 = vmatmul.mubr.bf16.gmra.mxu0 %v1105_v12  ;;  %1007 = vmatprep.subr.mxu0 %v507_v24 }
  0x46   :  { %959 = vmatprep.mubr.bf16.mxu0 %v1106_v13  ;;  %1008 = vmatpush3.msra.mxu0 %v507_v24 }
  0x47   :  { %1009 = vmatprep.subr.mxu0 %v506_v25 }
  0x48   :  { %1010 = vmatpush3.msra.mxu0 %v506_v25 }
  0x49   :  { %1011 = vmatprep.subr.mxu0 %v505_v26 }
  0x4a   :  { %1012 = vmatpush3.msra.mxu0 %v505_v26 }
  0x4b   :  { %1013 = vmatprep.subr.mxu0 %v504_v27 }
  0x4c   :  { %1014 = vmatpush3.msra.mxu0 %v504_v27 }
  0x4d   :  { %960 = vmatmul.mubr.bf16.gmra.mxu0 %v1107_v14  ;;  %1015 = vmatprep.subr.mxu0 %v503_v28 }
  0x4e   :  { %963 = vmatprep.mubr.bf16.mxu0 %v1108_v15  ;;  %1016 = vmatpush3.msra.mxu0 %v503_v28 }
  0x4f   :  { %1017 = vmatprep.subr.mxu0 %v502_v29 }
  0x50   :  { %1018 = vmatpush3.msra.mxu0 %v502_v29 }
  0x51   :  { %1019 = vmatprep.subr.mxu0 %v501_v30 }
  0x52   :  { %1020 = vmatpush3.msra.mxu0 %v501_v30 }
  0x53   :  { %1021 = vmatprep.subr.mxu0 %v500_v31 }
  0x54   :  { %1022 = vmatpush3.msra.mxu0 %v500_v31 }
  0x55   :  { %964 = vmatmul.mubr.bf16.gmra.mxu0 %v1109_v16  ;;  %1023 = vmatprep.subr.mxu0 %v499_v48 }
  0x56   :  { %1024 = vmatpush3.msra.mxu0 %v499_v48 }
  0x57   :  { %1025 = vmatprep.subr.mxu0 %v498_v49 }
  0x58   :  { %1026 = vmatpush3.msra.mxu0 %v498_v49 }
  0x59   :  { %1027 = vmatprep.subr.mxu0 %v497_v50 }
  0x5a   :  { %1028 = vmatpush3.msra.mxu0 %v497_v50 }
  0x5b   :  { %1029 = vmatprep.subr.mxu0 %v496_v51 }
  0x5c   :  { %1030 = vmatpush3.msra.mxu0 %v496_v51 }
  0xfd   :  { %v953_v32 = vpop.f32.mrf.mxu0 }
  0xff   :  { %v212_v33 = vpop.f32.mrf.mxu0 }
 0x100   :  { %975 = vmatprep.mubr.msk.f32.mxu1 %vm286_vm0, %v212_v33 }
 0x101   :  { %v954_v34 = vpop.f32.mrf.mxu0 }
 0x103   :  { %v215_v35 = vpop.f32.mrf.mxu0 }
 0x104   :  { %976 = vmatmul.mubr.msk.f32.vlgmr.msra.gmra.mxu1 %vm286_vm0, %v215_v35 }
 0x105   :  { %v957_v36 = vpop.f32.mrf.mxu0  ;;  %978 = vmatprep.mubr.msk.f32.mxu1 %vm286_vm0, %v953_v32  ;;  %1071 = vmatpush3.msra.mxu1 %v511_v20 }
 0x106   :  { %1056 = vmatprep.subr.mxu1 %v510_v21 }
 0x107   :  { %v228_v37 = vpop.f32.mrf.mxu0  ;;  %1072 = vmatpush3.msra.mxu1 %v510_v21 }
 0x108   :  { %979 = vmatmul.mubr.msk.f32.gmra.mxu1 %vm286_vm0, %v954_v34  ;;  %1057 = vmatprep.subr.mxu1 %v509_v22 }
 0x109   :  { %v958_v38 = vpop.f32.mrf.mxu0  ;;  %981 = vmatprep.mubr.msk.f32.mxu1 %vm286_vm0, %v228_v37  ;;  %1073 = vmatpush3.msra.mxu1 %v509_v22 }
 0x10a   :  { %1058 = vmatprep.subr.mxu1 %v508_v23 }
 0x10b   :  { %v231_v39 = vpop.f32.mrf.mxu0  ;;  %1074 = vmatpush3.msra.mxu1 %v508_v23 }
 0x10c   :  { %982 = vmatmul.mubr.msk.f32.gmra.mxu1 %vm286_vm0, %v231_v39  ;;  %1059 = vmatprep.subr.mxu1 %v507_v24 }
 0x10d   :  { %v961_v40 = vpop.f32.mrf.mxu0  ;;  %984 = vmatprep.mubr.msk.f32.mxu1 %vm286_vm0, %v957_v36  ;;  %1075 = vmatpush3.msra.mxu1 %v507_v24 }
 0x10e   :  { %1060 = vmatprep.subr.mxu1 %v506_v25 }
 0x10f   :  { %v244_v41 = vpop.f32.mrf.mxu0  ;;  %1076 = vmatpush3.msra.mxu1 %v506_v25 }
 0x110   :  { %985 = vmatmul.mubr.msk.f32.gmra.mxu1 %vm286_vm0, %v958_v38  ;;  %1061 = vmatprep.subr.mxu1 %v505_v26 }
 0x111   :  { %v962_v42 = vpop.f32.mrf.mxu0  ;;  %987 = vmatprep.mubr.msk.f32.mxu1 %vm286_vm0, %v244_v41  ;;  %1077 = vmatpush3.msra.mxu1 %v505_v26 }
 0x112   :  { %1062 = vmatprep.subr.mxu1 %v504_v27 }
 0x113   :  { %v247_v43 = vpop.f32.mrf.mxu0  ;;  %1078 = vmatpush3.msra.mxu1 %v504_v27 }
 0x114   :  { %988 = vmatmul.mubr.msk.f32.gmra.mxu1 %vm286_vm0, %v247_v43  ;;  %1063 = vmatprep.subr.mxu1 %v503_v28 }
 0x115   :  { %v965_v44 = vpop.f32.mrf.mxu0  ;;  %990 = vmatprep.mubr.msk.f32.mxu1 %vm286_vm0, %v961_v40  ;;  %1079 = vmatpush3.msra.mxu1 %v503_v28 }
 0x116   :  { %1064 = vmatprep.subr.mxu1 %v502_v29 }
 0x117   :  { %v260_v45 = vpop.f32.mrf.mxu0  ;;  %1080 = vmatpush3.msra.mxu1 %v502_v29 }
 0x118   :  { %991 = vmatmul.mubr.msk.f32.gmra.mxu1 %vm286_vm0, %v962_v42  ;;  %1065 = vmatprep.subr.mxu1 %v501_v30 }
 0x119   :  { %v966_v46 = vpop.f32.mrf.mxu0  ;;  %993 = vmatprep.mubr.msk.f32.mxu1 %vm286_vm0, %v260_v45  ;;  %1081 = vmatpush3.msra.mxu1 %v501_v30 }
 0x11a   :  { %1066 = vmatprep.subr.mxu1 %v500_v31 }
 0x11b   :  { %v263_v47 = vpop.f32.mrf.mxu0  ;;  %1082 = vmatpush3.msra.mxu1 %v500_v31 }
 0x11c   :  { %994 = vmatmul.mubr.msk.f32.gmra.mxu1 %vm286_vm0, %v263_v47  ;;  %1067 = vmatprep.subr.mxu1 %v499_v48 }
 0x11d   :  { %996 = vmatprep.mubr.msk.f32.mxu1 %vm286_vm0, %v965_v44  ;;  %1083 = vmatpush3.msra.mxu1 %v499_v48 }
 0x11e   :  { %1068 = vmatprep.subr.mxu1 %v498_v49 }
 0x11f   :  { %1084 = vmatpush3.msra.mxu1 %v498_v49 }
 0x120   :  { %997 = vmatmul.mubr.msk.f32.gmra.mxu1 %vm286_vm0, %v966_v46  ;;  %1069 = vmatprep.subr.mxu1 %v497_v50 }
 0x121   :  { %1085 = vmatpush3.msra.mxu1 %v497_v50 }
 0x122   :  { %1070 = vmatprep.subr.mxu1 %v496_v51 }
 0x123   :  { %1086 = vmatpush3.msra.mxu1 %v496_v51 }
 0x1c4   :  { %v977_v53 = vpop.f32.mrf.mxu1 }
 0x1c5   :  { %v407_v54 = vadd.f32 %v977_v53, %v771_v52 }
 0x1c6   :  { %v401_v55 = vpop.f32.mrf.mxu1 }
 0x1c7   :  { %v402_v56 = vadd.f32 %v771_v52, %v401_v55  ;;  %v481_v59 = vmax.f32 %v407_v54, 0.0 }
 0x1c8   :  { %v980_v57 = vpop.f32.mrf.mxu1 }
 0x1c9   :  { %v480_v58 = vmax.f32 %v402_v56, 0.0  ;;  %v417_v60 = vadd.f32 %v980_v57, %v771_v52 }
 0x1ca   :  { %v411_v61 = vpop.f32.mrf.mxu1 }
 0x1cb   :  { %v412_v62 = vadd.f32 %v771_v52, %v411_v61  ;;  %1031 = vmatprep.mubr.f32.mxu0 %v480_v58  ;;  %v483_v1 = vmax.f32 %v417_v60, 0.0 }
 0x1cc   :  { %v983_v63 = vpop.f32.mrf.mxu1  ;;  %1032 = vmatmul.mubr.f32.vlgmr.msra.gmra.mxu0 %v481_v59 }
 0x1cd   :  { %v482_v0 = vmax.f32 %v412_v62, 0.0  ;;  %v427_v2 = vadd.f32 %v983_v63, %v771_v52 }
 0x1ce   :  { %v421_v3 = vpop.f32.mrf.mxu1 }
 0x1cf   :  { %v422_v4 = vadd.f32 %v771_v52, %v421_v3  ;;  %1034 = vmatprep.mubr.f32.mxu1 %v482_v0  ;;  %v485_v7 = vmax.f32 %v427_v2, 0.0 }
 0x1d0   :  { %v986_v5 = vpop.f32.mrf.mxu1  ;;  %1035 = vmatmul.mubr.f32.vlgmr.msra.gmra.mxu1 %v483_v1 }
 0x1d1   :  { %v484_v6 = vmax.f32 %v422_v4, 0.0  ;;  %v437_v8 = vadd.f32 %v986_v5, %v771_v52 }
 0x1d2   :  { %v431_v9 = vpop.f32.mrf.mxu1 }
 0x1d3   :  { %v432_v10 = vadd.f32 %v771_v52, %v431_v9  ;;  %1037 = vmatprep.mubr.f32.mxu1 %v484_v6  ;;  %v487_v13 = vmax.f32 %v437_v8, 0.0 }
 0x1d4   :  { %v989_v11 = vpop.f32.mrf.mxu1  ;;  %1038 = vmatmul.mubr.f32.gmra.mxu1 %v485_v7 }
 0x1d5   :  { %v486_v12 = vmax.f32 %v432_v10, 0.0  ;;  %v447_v14 = vadd.f32 %v989_v11, %v771_v52 }
 0x1d6   :  { %v441_v15 = vpop.f32.mrf.mxu1 }
 0x1d7   :  { %v442_v16 = vadd.f32 %v771_v52, %v441_v15  ;;  %1040 = vmatprep.mubr.f32.mxu1 %v486_v12  ;;  %v489_v19 = vmax.f32 %v447_v14, 0.0 }
 0x1d8   :  { %v992_v17 = vpop.f32.mrf.mxu1  ;;  %1041 = vmatmul.mubr.f32.gmra.mxu1 %v487_v13 }
 0x1d9   :  { %v488_v18 = vmax.f32 %v442_v16, 0.0  ;;  %v457_v20 = vadd.f32 %v992_v17, %v771_v52 }
 0x1da   :  { %v451_v21 = vpop.f32.mrf.mxu1 }
 0x1db   :  { %v452_v22 = vadd.f32 %v771_v52, %v451_v21  ;;  %1043 = vmatprep.mubr.f32.mxu1 %v488_v18  ;;  %v491_v25 = vmax.f32 %v457_v20, 0.0 }
 0x1dc   :  { %v995_v23 = vpop.f32.mrf.mxu1  ;;  %1044 = vmatmul.mubr.f32.gmra.mxu1 %v489_v19 }
 0x1dd   :  { %v490_v24 = vmax.f32 %v452_v22, 0.0  ;;  %v467_v26 = vadd.f32 %v995_v23, %v771_v52 }
 0x1de   :  { %v461_v27 = vpop.f32.mrf.mxu1 }
 0x1df   :  { %v462_v28 = vadd.f32 %v771_v52, %v461_v27  ;;  %1046 = vmatprep.mubr.f32.mxu1 %v490_v24  ;;  %v493_v31 = vmax.f32 %v467_v26, 0.0 }
 0x1e0   :  { %v998_v29 = vpop.f32.mrf.mxu1  ;;  %1047 = vmatmul.mubr.f32.gmra.mxu1 %v491_v25 }
 0x1e1   :  { %v492_v30 = vmax.f32 %v462_v28, 0.0  ;;  %v477_v32 = vadd.f32 %v998_v29, %v771_v52 }
 0x1e2   :  { %v471_v33 = vpop.f32.mrf.mxu1 }
 0x1e3   :  { %v472_v34 = vadd.f32 %v771_v52, %v471_v33  ;;  %1049 = vmatprep.mubr.f32.mxu1 %v492_v30  ;;  %v495_v36 = vmax.f32 %v477_v32, 0.0 }
 0x1e4   :  { %1050 = vmatmul.mubr.f32.gmra.mxu1 %v493_v31 }
 0x1e5   :  { %v494_v35 = vmax.f32 %v472_v34, 0.0 }
 0x1e7   :  { %1052 = vmatprep.mubr.f32.mxu1 %v494_v35 }
 0x1e8   :  { %1053 = vmatmul.mubr.f32.gmra.mxu1 %v495_v36 }
 0x28c   :  { %v1033_v37 = vpop.f32.mrf.mxu0 }
 0x28e   :  { %v578_v38 = vpop.f32.mrf.mxu0 }
 0x28f   :  { %v823_v39 = vpack.c.bf16 %v1033_v37, %v578_v38 }
 0x290   :  { %v1036_v40 = vpop.f32.mrf.mxu1 }
 0x291   :  { %824 = vst [vmem:[#allocation7] sm:$0xff] %v823_v39  }
 0x292   :  { %v588_v41 = vpop.f32.mrf.mxu1 }
 0x293   :  { %v828_v42 = vpack.c.bf16 %v1036_v40, %v588_v41 }
 0x294   :  { %v1039_v43 = vpop.f32.mrf.mxu1 }
 0x295   :  { %860 = vst [vmem:[#allocation7 + $0x8] sm:$0xff] %v828_v42  }
 0x296   :  { %v598_v44 = vpop.f32.mrf.mxu1 }
 0x297   :  { %v833_v45 = vpack.c.bf16 %v1039_v43, %v598_v44 }
 0x298   :  { %v1042_v46 = vpop.f32.mrf.mxu1 }
 0x299   :  { %861 = vst [vmem:[#allocation7 + $0x10] sm:$0xff] %v833_v45  }
 0x29a   :  { %v608_v47 = vpop.f32.mrf.mxu1 }
 0x29b   :  { %v838_v48 = vpack.c.bf16 %v1042_v46, %v608_v47 }
 0x29c   :  { %v1045_v49 = vpop.f32.mrf.mxu1 }
 0x29d   :  { %862 = vst [vmem:[#allocation7 + $0x18] sm:$0xff] %v838_v48  }
 0x29e   :  { %v618_v50 = vpop.f32.mrf.mxu1 }
 0x29f   :  { %v843_v51 = vpack.c.bf16 %v1045_v49, %v618_v50 }
 0x2a0   :  { %v1048_v52 = vpop.f32.mrf.mxu1 }
 0x2a1   :  { %863 = vst [vmem:[#allocation7 + $0x20] sm:$0xff] %v843_v51  }
 0x2a2   :  { %v628_v53 = vpop.f32.mrf.mxu1 }
 0x2a3   :  { %v848_v54 = vpack.c.bf16 %v1048_v52, %v628_v53 }
 0x2a4   :  { %v1051_v55 = vpop.f32.mrf.mxu1 }
 0x2a5   :  { %864 = vst [vmem:[#allocation7 + $0x28] sm:$0xff] %v848_v54  }
 0x2a6   :  { %v638_v56 = vpop.f32.mrf.mxu1 }
 0x2a7   :  { %v853_v57 = vpack.c.bf16 %v1051_v55, %v638_v56 }
 0x2a8   :  { %v1054_v58 = vpop.f32.mrf.mxu1 }
 0x2a9   :  { %865 = vst [vmem:[#allocation7 + $0x30] sm:$0xff] %v853_v57  }
 0x2aa   :  { %v648_v59 = vpop.f32.mrf.mxu1 }
 0x2ab   :  { %v858_v60 = vpack.c.bf16 %v1054_v58, %v648_v59 }
 0x2ad   :  { %866 = vst [vmem:[#allocation7 + $0x38] sm:$0xff] %v858_v60  }
 0x2ae   :  { %1161 = shalt.err (!%p1158_p0)
}
 0x2af   :  { %s1181_s10 = smov 64   ;;  %s1182_s11 = smov 4  }
 0x2b0   :  { %748 = dma.vmem_to_hbm [thread:$0]  %s743_s9, 1024, %s1294_s5, [#allocation4], %s1181_s10, %s1181_s10, %s1182_s11  }
 0x2b1   :  { %1174 = dma.done.wait [#allocation4], 1024  }
 0x2b2   :  { %1175 = vsyncadd [#allocation4], 4294966272 }
 0x2b3   :  { %752 = vsyncpa [#allocation3], 1 }
 0x2b4   :  { %753 = vsyncpa [#allocation6], 1 }
 0x2b5   :  { %754 = vsyncpa [#allocation4], 1 }

</bundles_post_ra>
